<compile_context>
chip_gen: v5e
topology: v5e:2x2
jax: 0.10.0
libtpu: 0.0.40
codegen_flags: <defaults>
</compile_context>

<pallas_src>
import functools

import jax
import jax.numpy as jnp
from jax.experimental import pallas as pl
from jax.experimental.pallas import tpu as pltpu


def _round_up(n: int, m: int) -> int:
    return (n + m - 1) // m * m


def mlp_kernel(x_ref, w1_ref, b1_ref, w2_ref, b2_ref, o_ref, acc_ref):
    """One (batch_tile, hidden_tile) grid step of fc1 -> ReLU -> fc2."""
    h_idx = pl.program_id(1)

    @pl.when(h_idx == 0)
    def _():
        acc_ref[...] = jnp.zeros_like(acc_ref)

    # fc1 partial: (TB, I) @ (I, TH) with f32 accumulation on the MXU.
    hid = jnp.dot(x_ref[...], w1_ref[...], preferred_element_type=jnp.float32)
    # Bias add + ReLU in f32 (portable: v5e's VPU has no bf16 elementwise).
    hid = jnp.maximum(hid + b1_ref[...], 0.0)
    # fc2 partial over this hidden block; cast activations to the MXU input
    # dtype (bf16 under mixed precision), accumulate in f32 VMEM scratch.
    acc_ref[...] += jnp.dot(hid.astype(w2_ref.dtype), w2_ref[...],
                            preferred_element_type=jnp.float32)

    @pl.when(h_idx == pl.num_programs(1) - 1)
    def _():
        o_ref[...] = (acc_ref[...] + b2_ref[...]).astype(o_ref.dtype)


def prepare_params(w1, b1, w2, b2, *, mxu_dtype=None, block_h=512):
    """One-time weight prep (hoisted out of the forward path).

    w1: (I, H), b1: (H,), w2: (H, O), b2: (O,).
    mxu_dtype: optional MXU-input dtype for x/W1/W2 (e.g. jnp.bfloat16);
               accumulation, bias add and ReLU stay f32.
    block_h:   hidden-dim tile (multiple of 128) used to K-block the reduction
               when H is large.
    """
    assert block_h % 128 == 0
    I, H = w1.shape
    Hc, O = w2.shape
    assert Hc == H and b1.shape == (H,) and b2.shape == (O,)

    mxu_dtype = w1.dtype if mxu_dtype is None else jnp.dtype(mxu_dtype)

    # Lane-dense padding: output features and hidden features to multiples of
    # 128 (zero pad -> unmasked vst, clean (8,128)/(16,128) tiles).  Zero rows
    # in W2 make any padded-hidden contribution exactly 0.
    O_pad = _round_up(O, 128)
    H_pad = _round_up(H, 128)
    if H_pad > block_h:
        H_pad = _round_up(H, block_h)
    block_h = min(block_h, H_pad)

    w1p = jnp.pad(w1, ((0, 0), (0, H_pad - H))).astype(mxu_dtype)
    w2p = jnp.pad(w2, ((0, H_pad - H), (0, O_pad - O))).astype(mxu_dtype)
    b1p = jnp.pad(b1, (0, H_pad - H)).reshape(1, H_pad).astype(jnp.float32)
    b2p = jnp.pad(b2, (0, O_pad - O)).reshape(1, O_pad).astype(jnp.float32)

    return {
        "w1": w1p, "b1": b1p, "w2": w2p, "b2": b2p,
        "in_features": I, "hidden_features": H, "out_features": O,
        "block_h": block_h, "mxu_dtype": mxu_dtype,
    }


def mlp_forward(x, params, *, block_b=128, out_dtype=jnp.float32):
    """x: (B, I) -> (B, O).  `params` from prepare_params()."""
    w1, b1, w2, b2 = params["w1"], params["b1"], params["w2"], params["b2"]
    I = params["in_features"]
    H = params["hidden_features"]
    O = params["out_features"]
    TH = params["block_h"]
    mxu_dtype = params["mxu_dtype"]

    B = x.shape[0]
    assert x.shape[1] == I
    H_pad = w1.shape[1]
    O_pad = w2.shape[1]

    # Activations are cast per call (unavoidable; weights were cast once).
    if x.dtype != mxu_dtype:
        x = x.astype(mxu_dtype)

    # Sub-32-bit dtypes pack 2+ rows per sublane -> align batch tiles to 16.
    sub = 16 if jnp.dtype(mxu_dtype).itemsize < 4 else 8

    # Batch tile: cap at block_b, but when the batch allows >= 2 tiles make
    # sure the grid actually has >= 2 steps so v7x's 2 TensorCores both work.
    b_align = _round_up(B, sub)
    TB = min(block_b, b_align)
    if b_align > sub:
        TB = min(TB, max(sub, _round_up((b_align + 1) // 2, sub)))
    B_pad = _round_up(B, TB)
    if B_pad != B:
        x = jnp.pad(x, ((0, B_pad - B), (0, 0)))

    grid = (B_pad // TB, H_pad // TH)

    # Explicit scoped-VMEM budget from the real per-step footprint
    # (double-buffered streamed tiles + f32 accumulator + margin).
    w_itemsize = jnp.dtype(mxu_dtype).itemsize
    o_itemsize = jnp.dtype(out_dtype).itemsize
    per_step = (TB * I * w_itemsize            # x tile
                + I * TH * w_itemsize          # w1 tile
                + TH * O_pad * w_itemsize      # w2 tile
                + (TH + O_pad) * 4             # biases (f32)
                + TB * O_pad * o_itemsize)     # out tile
    vmem_limit = int(min(max(3 * per_step + TB * O_pad * 4 + (1 << 20),
                             32 << 20),
                         64 << 20))

    # Advisory cost on the true (unpadded) problem size.
    flops = 2 * B * (I * H + H * O)
    bytes_accessed = (B * I * w_itemsize
                      + I * H * w_itemsize + H * O * w_itemsize
                      + (H + O) * 4
                      + B * O * o_itemsize)

    # TODO(synk): once pl.Buffered(1) single-buffering for constant-index
    # operands is confirmed on the deployed jax version, tag b2 (and w1/b1/w2
    # in the single-H-step case) with pipeline_mode=pl.Buffered(1) to halve
    # their resident VMEM; K-blocking above already bounds per-step weight
    # tiles, so default double-buffering is the desired behaviour when H is
    # large.  If profiling at large B shows exposed x-tile DMA, bump the x
    # BlockSpec to pipeline_mode=pl.Buffered(3).
    out_padded = pl.pallas_call(
        mlp_kernel,
        out_shape=jax.ShapeDtypeStruct((B_pad, O_pad), out_dtype),
        grid_spec=pltpu.PrefetchScalarGridSpec(
            num_scalar_prefetch=0,
            grid=grid,
            in_specs=[
                pl.BlockSpec((TB, I), lambda i, h: (i, 0)),       # x tile
                pl.BlockSpec((I, TH), lambda i, h: (0, h)),       # W1 tile
                pl.BlockSpec((1, TH), lambda i, h: (0, h)),       # b1 tile
                pl.BlockSpec((TH, O_pad), lambda i, h: (h, 0)),   # W2 tile
                pl.BlockSpec((1, O_pad), lambda i, h: (0, 0)),    # b2
            ],
            out_specs=pl.BlockSpec((TB, O_pad), lambda i, h: (i, 0)),
            scratch_shapes=[pltpu.VMEM((TB, O_pad), jnp.float32)],
        ),
        compiler_params=pltpu.CompilerParams(
            dimension_semantics=("parallel", "arbitrary"),
            vmem_limit_bytes=vmem_limit,
        ),
        cost_estimate=pl.CostEstimate(
            flops=flops, transcendentals=0, bytes_accessed=bytes_accessed),
    )(x, w1, b1, w2, b2)

    return out_padded[:B, :O]


if __name__ == "__main__":
    # Small shapes consistent with the module: Linear -> ReLU -> Linear.
    batch, input_size, hidden_size, output_size = 8, 32, 64, 16

    key = jax.random.PRNGKey(0)
    kx, k1, kb1, k2, kb2 = jax.random.split(key, 5)

    x = jax.random.normal(kx, (batch, input_size), dtype=jnp.float32)
    # PyTorch Linear weight is (out, in); stored here as (in, out) so the
    # kernel does x @ W.
    w1 = jax.random.normal(k1, (input_size, hidden_size), dtype=jnp.float32) * 0.1
    b1 = jax.random.normal(kb1, (hidden_size,), dtype=jnp.float32) * 0.1
    w2 = jax.random.normal(k2, (hidden_size, output_size), dtype=jnp.float32) * 0.1
    b2 = jax.random.normal(kb2, (output_size,), dtype=jnp.float32) * 0.1

    # Pure-JAX reference.
    ref = jnp.maximum(x @ w1 + b1, 0.0) @ w2 + b2

    # f32 path (exact, tight tolerance).
    params_f32 = prepare_params(w1, b1, w2, b2)          # one-time weight prep
    out = jax.block_until_ready(mlp_forward(x, params_f32))
    assert out.shape == (batch, output_size)
    assert jnp.allclose(out, ref, atol=1e-5, rtol=1e-5)

    # bf16-MXU-input path (f32 accumulation / epilogue), looser tolerance.
    params_bf16 = prepare_params(w1, b1, w2, b2, mxu_dtype=jnp.bfloat16)
    out_bf16 = jax.block_until_ready(mlp_forward(x, params_bf16))
    assert out_bf16.shape == (batch, output_size)
    assert jnp.allclose(out_bf16, ref, atol=3e-2, rtol=3e-2)

    print("KERNEL_OK")
</pallas_src>

<mosaic_0001>
module attributes {stable_mosaic.version = 11 : i64} {
  func.func @mlp_kernel(%arg0: i32, %arg1: i32, %arg2: memref<8x32xf32, #tpu.memory_space<vmem>>, %arg3: memref<32x128xf32, #tpu.memory_space<vmem>>, %arg4: memref<1x128xf32, #tpu.memory_space<vmem>>, %arg5: memref<128x128xf32, #tpu.memory_space<vmem>>, %arg6: memref<1x128xf32, #tpu.memory_space<vmem>>, %arg7: memref<8x128xf32, #tpu.memory_space<vmem>>, %arg8: memref<8x128xf32, #tpu.memory_space<vmem>>) attributes {dimension_semantics = [#tpu.dimension_semantics<parallel>, #tpu.dimension_semantics<arbitrary>], iteration_bounds = array<i64: 1, 1>, scalar_prefetch = 0 : i64, scratch_operands = 1 : i64, tpu.core_type = #tpu.core_type<tc>, window_params = [{transform_indices = @transform_0, window_bounds = array<i64: 8, 32>}, {transform_indices = @transform_1, window_bounds = array<i64: 32, 128>}, {transform_indices = @transform_2, window_bounds = array<i64: 1, 128>}, {transform_indices = @transform_3, window_bounds = array<i64: 128, 128>}, {pipeline_mode = #tpu.pipeline_mode<synchronous>, transform_indices = @transform_4, window_bounds = array<i64: 1, 128>}, {transform_indices = @transform_5, window_bounds = array<i64: 8, 128>}]} {
    %c0_i32 = arith.constant 0 : i32
    %0 = arith.cmpi eq, %arg1, %c0_i32 : i32
    %1 = arith.extui %0 : i1 to i32
    %c0_i32_0 = arith.constant 0 : i32
    %2 = arith.cmpi ne, %1, %c0_i32_0 : i32
    scf.if %2 {
      %cst_16 = arith.constant 0.000000e+00 : f32
      %19 = vector.broadcast %cst_16 : f32 to vector<8x128xf32>
      %c0_17 = arith.constant 0 : index
      %c0_18 = arith.constant 0 : index
      %20 = vector.load %arg8[%c0_17, %c0_18] : memref<8x128xf32, #tpu.memory_space<vmem>>, vector<8x128xf32>
      tpu.vector_store %arg8[%c0_17, %c0_18], %19 {strides = array<i32>} : memref<8x128xf32, #tpu.memory_space<vmem>>, vector<8x128xf32>,
    } else {
    }
    %c0 = arith.constant 0 : index
    %c0_1 = arith.constant 0 : index
    %3 = vector.load %arg2[%c0, %c0_1] : memref<8x32xf32, #tpu.memory_space<vmem>>, vector<8x32xf32>
    %c0_2 = arith.constant 0 : index
    %c0_3 = arith.constant 0 : index
    %4 = vector.load %arg3[%c0_2, %c0_3] : memref<32x128xf32, #tpu.memory_space<vmem>>, vector<32x128xf32>
    %cst = arith.constant dense<0.000000e+00> : vector<8x128xf32>
    %5 = tpu.matmul %3, %4, %cst {dimension_numbers = #tpu.dot_dimension_numbers<[1], [0], [0], [1], [0, 0, 1, 1], [], []>} : vector<8x32xf32>, vector<32x128xf32>, vector<8x128xf32> -> vector<8x128xf32>
    %c0_4 = arith.constant 0 : index
    %c0_5 = arith.constant 0 : index
    %6 = vector.load %arg4[%c0_4, %c0_5] : memref<1x128xf32, #tpu.memory_space<vmem>>, vector<1x128xf32>
    %7 = vector.broadcast %6 : vector<1x128xf32> to vector<8x128xf32>
    %8 = arith.addf %5, %7 : vector<8x128xf32>
    %cst_6 = arith.constant 0.000000e+00 : f32
    %9 = vector.broadcast %cst_6 : f32 to vector<8x128xf32>
    %10 = arith.maximumf %8, %9 : vector<8x128xf32>
    %c0_7 = arith.constant 0 : index
    %c0_8 = arith.constant 0 : index
    %11 = vector.load %arg8[%c0_7, %c0_8] : memref<8x128xf32, #tpu.memory_space<vmem>>, vector<8x128xf32>
    %c0_9 = arith.constant 0 : index
    %c0_10 = arith.constant 0 : index
    %12 = vector.load %arg5[%c0_9, %c0_10] : memref<128x128xf32, #tpu.memory_space<vmem>>, vector<128x128xf32>
    %cst_11 = arith.constant dense<0.000000e+00> : vector<8x128xf32>
    %13 = tpu.matmul %10, %12, %cst_11 {dimension_numbers = #tpu.dot_dimension_numbers<[1], [0], [0], [1], [0, 0, 1, 1], [], []>} : vector<8x128xf32>, vector<128x128xf32>, vector<8x128xf32> -> vector<8x128xf32>
    %14 = arith.addf %11, %13 : vector<8x128xf32>
    %c0_12 = arith.constant 0 : index
    %c0_13 = arith.constant 0 : index
    %15 = vector.load %arg8[%c0_12, %c0_13] : memref<8x128xf32, #tpu.memory_space<vmem>>, vector<8x128xf32>
    tpu.vector_store %arg8[%c0_12, %c0_13], %14 {strides = array<i32>} : memref<8x128xf32, #tpu.memory_space<vmem>>, vector<8x128xf32>,
    %c0_i32_14 = arith.constant 0 : i32
    %16 = arith.cmpi eq, %arg1, %c0_i32_14 : i32
    %17 = arith.extui %16 : i1 to i32
    %c0_i32_15 = arith.constant 0 : i32
    %18 = arith.cmpi ne, %17, %c0_i32_15 : i32
    scf.if %18 {
      %c0_16 = arith.constant 0 : index
      %c0_17 = arith.constant 0 : index
      %19 = vector.load %arg8[%c0_16, %c0_17] : memref<8x128xf32, #tpu.memory_space<vmem>>, vector<8x128xf32>
      %c0_18 = arith.constant 0 : index
      %c0_19 = arith.constant 0 : index
      %20 = vector.load %arg6[%c0_18, %c0_19] : memref<1x128xf32, #tpu.memory_space<vmem>>, vector<1x128xf32>
      %21 = vector.broadcast %20 : vector<1x128xf32> to vector<8x128xf32>
      %22 = arith.addf %19, %21 : vector<8x128xf32>
      %c0_20 = arith.constant 0 : index
      %c0_21 = arith.constant 0 : index
      %23 = vector.load %arg7[%c0_20, %c0_21] : memref<8x128xf32, #tpu.memory_space<vmem>>, vector<8x128xf32>
      tpu.vector_store %arg7[%c0_20, %c0_21], %22 {strides = array<i32>} : memref<8x128xf32, #tpu.memory_space<vmem>>, vector<8x128xf32>,
    } else {
    }
    return
  }
  func.func @transform_0(%arg0: i32, %arg1: i32) -> (i32, i32) {
    %c0_i32 = arith.constant 0 : i32
    %c0_i32_0 = arith.constant 0 : i32
    return %arg0, %c0_i32 : i32, i32
  }
  func.func @transform_1(%arg0: i32, %arg1: i32) -> (i32, i32) {
    %c0_i32 = arith.constant 0 : i32
    %c0_i32_0 = arith.constant 0 : i32
    return %c0_i32, %arg1 : i32, i32
  }
  func.func @transform_2(%arg0: i32, %arg1: i32) -> (i32, i32) {
    %c0_i32 = arith.constant 0 : i32
    %c0_i32_0 = arith.constant 0 : i32
    return %c0_i32, %arg1 : i32, i32
  }
  func.func @transform_3(%arg0: i32, %arg1: i32) -> (i32, i32) {
    %c0_i32 = arith.constant 0 : i32
    %c0_i32_0 = arith.constant 0 : i32
    return %arg1, %c0_i32 : i32, i32
  }
  func.func @transform_4(%arg0: i32, %arg1: i32) -> (i32, i32) {
    %c0_i32 = arith.constant 0 : i32
    %c0_i32_0 = arith.constant 0 : i32
    %c0_i32_1 = arith.constant 0 : i32
    return %c0_i32, %c0_i32_0 : i32, i32
  }
  func.func @transform_5(%arg0: i32, %arg1: i32) -> (i32, i32) {
    %c0_i32 = arith.constant 0 : i32
    %c0_i32_0 = arith.constant 0 : i32
    return %arg0, %c0_i32 : i32, i32
  }
}

</mosaic_0001>

<bundles_post_ra>
// kernel: tpu_custom_call.1
= control target key start
LH: loop header
LB: loop body
LE: loop exit
PB: predicated region body
PF: predicated region fallthrough
CT: control target
= control target key end

     0   :  { %10 = vsyncpa [#allocation4], 0  ;;  %s337_s0 = inlined_call_operand.hbm [shape: f32[8,32], index: 0, kind: input, shape index: {}]   ;;  %s338_s1 = inlined_call_operand.hbm [shape: f32[32,128], index: 1, kind: input, shape index: {}]   ;;  %s339_s2 = inlined_call_operand.vmem [shape: f32[1,128], index: 2, kind: input, shape index: {}]   ;;  %s340_s3 = inlined_call_operand.hbm [shape: f32[128,128], index: 3, kind: input, shape index: {}]   ;;  %s341_s4 = inlined_call_operand.vmem [shape: f32[1,128], index: 4, kind: input, shape index: {}]   ;;  %s342_s5 = inlined_call_operand.hbm [shape: f32[8,128], index: 5, kind: output, shape index: {}]  }
   0x1   :  { %11 = vsyncpa [#allocation7], 0  ;;  %s28_s20 = sshll.u32 %s338_s1, 4  ;;  %s29_s20 = int_to_ptr.hbm [resolvable:$true] %s28_s20 }
   0x2   :  { %12 = vsyncpa [#allocation5], 0  ;;  %s283_s21 = smov [#allocation6]   ;;  %s18_s25 = sshll.u32 %s337_s0, 4  ;;  %s19_s25 = int_to_ptr.hbm [resolvable:$true] %s18_s25 }
   0x3   :  { %s30_s22 = sshll.u32 %s283_s21, 4  ;;  %s284_s26 = smov 128   ;;  %s31_s22 = int_to_ptr.vmem [resolvable:$true] %s30_s22 }
   0x4   :  { %s285_s27 = smov 8   ;;  %s286_s28 = smov [#allocation3]  }
   0x5   :  { %36 = dma.hbm_to_vmem [thread:$0]  %s29_s20, 512, %s31_s22, [#allocation7], %s284_s26, %s284_s26, %s285_s27  }
   0x6   :  { %s20_s29 = sshll.u32 %s286_s28, 4  ;;  %s43_s7 = sshll.u32 %s340_s3, 4  ;;  %s21_s29 = int_to_ptr.vmem [resolvable:$true] %s20_s29  ;;  %s44_s7 = int_to_ptr.hbm [resolvable:$true] %s43_s7 }
   0x7   :  { %23 = dma.hbm_to_vmem [thread:$0]  %s19_s25, 128, %s21_s29, [#allocation4]  }
   0x8   :  { %s287_s1 = smov [#allocation8]  }
   0x9   :  { %s45_s8 = sshll.u32 %s287_s1, 4  ;;  %s46_s8 = int_to_ptr.vmem [resolvable:$true] %s45_s8 }
   0xa   :  { %51 = dma.hbm_to_vmem [thread:$0]  %s44_s7, 2048, %s46_s8, [#allocation7], %s284_s26, %s284_s26, %s285_s27  }
   0xb   :  { %277 = dma.done.wait [#allocation4], 128  }
   0xc   :  { %278 = vsyncadd [#allocation4], 4294967168 }
   0xd   :  { %279 = dma.done.wait [#allocation7], 2560  }
   0xe   :  { %280 = vsyncadd [#allocation7], 4294964736  ;;  %v75_v0 = vld [vmem:[#allocation6 + $0x18] sm:$0xff]  ;;  %v74_v1 = vld [vmem:[#allocation6 + $0x10] sm:$0xff]  ;;  %vm80_vm0 = vcmask 261120   ;;  %s288_s11 = smov [#allocation9]  }
   0xf   :  { %96 = vmatpush.msra.mxu0 %v75_v0  ;;  %v121_v2 = vld [vmem:[#allocation8 + $0x78] sm:$0xff]  ;;  %v73_v3 = vld [vmem:[#allocation6 + $0x8] sm:$0xff]  ;;  %v120_v4 = vld [vmem:[#allocation8 + $0x70] sm:$0xff]  ;;  %s159_s12 = sshll.u32 %s288_s11, 4  ;;  %s161_s15 = sshll.u32 %s342_s5, 4  ;;  %s160_s12 = int_to_ptr.vmem [resolvable:$true] %s159_s12  ;;  %s162_s15 = int_to_ptr.hbm [resolvable:$true] %s161_s15 }
  0x10   :  { %122 = vmatpush.msra.mxu1 %v121_v2  ;;  %v119_v5 = vld [vmem:[#allocation8 + $0x68] sm:$0xff]  ;;  %v72_v6 = vld [vmem:[#allocation6] sm:$0xff]  ;;  %v71_v7 = vld [vmem:[#allocation3] sm:$0xff] }
  0x11   :  { %97 = vmatpush.msra.mxu0 %v74_v1  ;;  %v118_v8 = vld [vmem:[#allocation8 + $0x60] sm:$0xff]  ;;  %v117_v9 = vld [vmem:[#allocation8 + $0x58] sm:$0xff]  ;;  %v116_v10 = vld [vmem:[#allocation8 + $0x50] sm:$0xff] }
  0x12   :  { %123 = vmatpush.msra.mxu1 %v120_v4  ;;  %v115_v11 = vld [vmem:[#allocation8 + $0x48] sm:$0xff]  ;;  %v114_v12 = vld [vmem:[#allocation8 + $0x40] sm:$0xff]  ;;  %v113_v13 = vld [vmem:[#allocation8 + $0x38] sm:$0xff] }
  0x13   :  { %98 = vmatpush.msra.mxu0 %v73_v3  ;;  %v112_v14 = vld [vmem:[#allocation8 + $0x30] sm:$0xff]  ;;  %v111_v15 = vld [vmem:[#allocation8 + $0x28] sm:$0xff]  ;;  %v110_v16 = vld [vmem:[#allocation8 + $0x20] sm:$0xff] }
  0x14   :  { %124 = vmatpush.msra.mxu1 %v119_v5  ;;  %v109_v17 = vld [vmem:[#allocation8 + $0x18] sm:$0xff]  ;;  %v108_v18 = vld [vmem:[#allocation8 + $0x10] sm:$0xff]  ;;  %v107_v19 = vld [vmem:[#allocation8 + $0x8] sm:$0xff] }
  0x15   :  { %99 = vmatpush.msra.mxu0 %v72_v6  ;;  %v106_v20 = vld [vmem:[#allocation8] sm:$0xff]  ;;  %v179_v21 = vld [vmem:[%s339_s2] ss:$0 sm:$0xff] }
  0x16   :  { %172 = vmatmul.msk.f32.vlgmr.msra.gmra.mxu0 %vm80_vm0, %v71_v7  ;;  %125 = vmatpush.msra.mxu1 %v118_v8  ;;  %v180_v25 = vld [vmem:[%s341_s4] ss:$0 sm:$0xff] }
  0x18   :  { %126 = vmatpush.msra.mxu1 %v117_v9 }
  0x1a   :  { %127 = vmatpush.msra.mxu1 %v116_v10 }
  0x1c   :  { %128 = vmatpush.msra.mxu1 %v115_v11 }
  0x1e   :  { %129 = vmatpush.msra.mxu1 %v114_v12 }
  0x20   :  { %130 = vmatpush.msra.mxu1 %v113_v13 }
  0x22   :  { %131 = vmatpush.msra.mxu1 %v112_v14 }
  0x24   :  { %132 = vmatpush.msra.mxu1 %v111_v15 }
  0x26   :  { %133 = vmatpush.msra.mxu1 %v110_v16 }
  0x28   :  { %134 = vmatpush.msra.mxu1 %v109_v17 }
  0x2a   :  { %135 = vmatpush.msra.mxu1 %v108_v18 }
  0x2c   :  { %136 = vmatpush.msra.mxu1 %v107_v19 }
  0x2e   :  { %137 = vmatpush.msra.mxu1 %v106_v20 }
  0x93   :  { %v101_v22 = vpop.f32.mrf.mxu0 }
  0x94   :  { %v102_v23 = vadd.f32 %v179_v21, %v101_v22 }
  0x96   :  { %v104_v24 = vmax.f32 %v102_v23, 0.0 }
  0x98   :  { %138 = vmatmul.f32.vlgmr.msra.gmra.mxu1 %v104_v24 }
 0x115   :  { %v139_v26 = vpop.f32.mrf.mxu1 }
 0x116   :  { %v152_v27 = vadd.f32 %v180_v25, %v139_v26 }
 0x118   :  { %153 = vst [vmem:[#allocation9] sm:$0xff] %v152_v27 }
 0x119   :  { %164 = dma.vmem_to_hbm [thread:$0]  %s160_s12, 128, %s162_s15, [#allocation5]  }
 0x11a   :  { %281 = dma.done.wait [#allocation5], 128  }
 0x11b   :  { %282 = vsyncadd [#allocation5], 4294967168 }
 0x11c   :  { %169 = vsyncpa [#allocation4], 1 }
 0x11d   :  { %170 = vsyncpa [#allocation7], 1 }
 0x11e   :  { %171 = vsyncpa [#allocation5], 1 }

</bundles_post_ra>
